<compile_context>
chip_gen: v6e
topology: v6e:2x2x1
jax: 0.10.0
libtpu: 0.0.40
codegen_flags: <defaults>
</compile_context>

<pallas_src>
import functools
import math

import jax
import jax.numpy as jnp
from jax import lax
from jax.experimental import pallas as pl
from jax.experimental.pallas import tpu as pltpu

_LANES = 128


def _round_up(n, m):
    return ((n + m - 1) // m) * m


def _sublanes_for(dtype):
    # f32 -> 8 sublanes per vreg, bf16 -> 16 (packed), etc.
    return max(8, 32 // jnp.dtype(dtype).itemsize)


def _gelu(x, approximate):
    if approximate:
        # tanh approximation -> EUP (otherwise-idle VLIW slot); opt-in only.
        return jax.nn.gelu(x, approximate=True)
    # PyTorch nn.GELU() default: exact erf GELU.
    return 0.5 * x * (1.0 + lax.erf(x * (1.0 / math.sqrt(2.0))))


# ----------------------------- hardware probes ------------------------------


def _num_tensorcores():
    devs = jax.devices()
    if not devs:
        return 1
    d = devs[0]
    for attr in ("num_cores", "core_count"):
        v = getattr(d, attr, None)
        if isinstance(v, int) and v > 0:
            return v
    return 1


def _vmem_capacity_bytes():
    try:
        info = pltpu.get_tpu_info()
        cap = getattr(info, "vmem_capacity_bytes", None)
        if cap:
            return int(cap)
    except (AttributeError, NotImplementedError, RuntimeError, TypeError,
            ValueError):
        pass
    return 64 << 20  # conservative default = v7x physical VMEM


# --------------------------------- kernels ----------------------------------


def _head_fused_kernel(x_ref, w1_ref, b1_ref, w2_ref, b2_ref, o_ref,
                       *, approx_gelu):
    # fc1: (tb, D) @ (D, Hp) -> f32 accumulate on the MXU.
    h = jnp.dot(x_ref[...].astype(w1_ref.dtype), w1_ref[...],
                preferred_element_type=jnp.float32)
    h = h + b1_ref[...]
    g = _gelu(h, approx_gelu)
    # TODO(synk): training-mode dropout (stochastic mask + 1/(1-p) scale) not
    # applied; eval/inference semantics (identity) are used.
    # fc2: (tb, Hp) @ (Hp, Op)
    out = jnp.dot(g.astype(w2_ref.dtype), w2_ref[...],
                  preferred_element_type=jnp.float32)
    o_ref[...] = (out + b2_ref[...]).astype(o_ref.dtype)


def _head_ktiled_kernel(x_ref, w1_ref, b1_ref, w2_ref, b2_ref, o_ref, h_acc,
                        *, approx_gelu):
    # Grid = (batch tiles, K tiles over D).  fc1 accumulates into f32 scratch;
    # GELU + fc2 run once on the last K step.
    k = pl.program_id(1)

    @pl.when(k == 0)
    def _():
        h_acc[...] = jnp.zeros_like(h_acc)

    h_acc[...] += jnp.dot(x_ref[...].astype(w1_ref.dtype), w1_ref[...],
                          preferred_element_type=jnp.float32)

    @pl.when(k == pl.num_programs(1) - 1)
    def _():
        g = _gelu(h_acc[...] + b1_ref[...], approx_gelu)
        # TODO(synk): training-mode dropout not applied (eval identity).
        out = jnp.dot(g.astype(w2_ref.dtype), w2_ref[...],
                      preferred_element_type=jnp.float32)
        o_ref[...] = (out + b2_ref[...]).astype(o_ref.dtype)


# --------------------------------- builders ---------------------------------


def _build_fused(kernel, block_b, D, Hp, Op, Bp, out_dtype, vmem_limit,
                 single_buffer_weights):
    wmode = pl.Buffered(1) if single_buffer_weights else None

    def resident(shape):
        # Constant index_map -> same block every grid step -> kept resident in
        # VMEM (single-buffered when the build supports Buffered(1)).
        return pl.BlockSpec(shape, lambda i: (0, 0), pipeline_mode=wmode)

    return pl.pallas_call(
        kernel,
        out_shape=jax.ShapeDtypeStruct((Bp, Op), out_dtype),
        grid=(Bp // block_b,),
        in_specs=[
            pl.BlockSpec((block_b, D), lambda i: (i, 0)),  # streamed x tile
            resident((D, Hp)),                             # w1
            resident((1, Hp)),                             # b1
            resident((Hp, Op)),                            # w2
            resident((1, Op)),                             # b2
        ],
        out_specs=pl.BlockSpec((block_b, Op), lambda i: (i, 0)),
        compiler_params=pltpu.CompilerParams(
            dimension_semantics=("parallel",),
            vmem_limit_bytes=int(vmem_limit),
        ),
    )


def _build_ktiled(kernel, block_b, Dp, tk, Hp, Op, Bp, out_dtype, vmem_limit,
                  single_buffer_weights):
    wmode = pl.Buffered(1) if single_buffer_weights else None

    def resident(shape):
        return pl.BlockSpec(shape, lambda i, k: (0, 0), pipeline_mode=wmode)

    return pl.pallas_call(
        kernel,
        out_shape=jax.ShapeDtypeStruct((Bp, Op), out_dtype),
        grid=(Bp // block_b, Dp // tk),
        in_specs=[
            pl.BlockSpec((block_b, tk), lambda i, k: (i, k)),  # x K-chunk
            pl.BlockSpec((tk, Hp), lambda i, k: (k, 0)),       # w1 K-chunk
            resident((1, Hp)),                                 # b1
            resident((Hp, Op)),                                # w2 (resident)
            resident((1, Op)),                                 # b2
        ],
        out_specs=pl.BlockSpec((block_b, Op), lambda i, k: (i, 0)),
        scratch_shapes=[pltpu.VMEM((block_b, Hp), jnp.float32)],
        compiler_params=pltpu.CompilerParams(
            dimension_semantics=("parallel", "arbitrary"),
            vmem_limit_bytes=int(vmem_limit),
        ),
    )


# --------------------------------- wrapper ----------------------------------

# Feature-detect pl.Buffered(1) support once per process; narrow exception set
# so real lowering/runtime errors are not swallowed.
_BUFFERED_WEIGHTS_OK = None
_BUFFERED_ERRORS = (TypeError, ValueError, NotImplementedError,
                    pltpu.LoweringException)


def head_forward(x, w1, b1, w2, b2, *, mxu_dtype=jnp.bfloat16, block_b=None,
                 k_block=None, approx_gelu=False):
    """Fused Head forward (eval mode).

    x: (B, D); w1: (D, H); b1: (H,); w2: (H, O); b2: (O,)
    (weights pre-transposed vs. PyTorch's (out, in) layout).
    mxu_dtype: matmul operand dtype (default bf16, f32 accumulation).
               Pass None for strict f32 numerics.
    k_block:   force the K-tiled (reduction over D) path with this tile size.
    """
    B, D = x.shape
    H = w1.shape[1]
    O = w2.shape[1]
    assert w1.shape[0] == D and w2.shape[0] == H
    assert b1.shape == (H,) and b2.shape == (O,)

    wdtype = mxu_dtype if mxu_dtype is not None else w1.dtype
    out_dtype = x.dtype

    # ---- Lane-dense padding of feature dims (zero rows/cols are inert). ----
    Hp = _round_up(H, _LANES)
    Op = _round_up(O, _LANES)
    w1p = jnp.pad(w1, ((0, 0), (0, Hp - H))).astype(wdtype)
    b1p = jnp.pad(b1, ((0, Hp - H),)).reshape(1, Hp).astype(jnp.float32)
    w2p = jnp.pad(w2, ((0, Hp - H), (0, Op - O))).astype(wdtype)
    b2p = jnp.pad(b2, ((0, Op - O),)).reshape(1, Op).astype(jnp.float32)

    # ---- Batch tiling: generation-aware (don't split on single-TC chips). ---
    sublanes = _sublanes_for(x.dtype)
    B8 = _round_up(max(B, 1), sublanes)
    n_cores = _num_tensorcores()
    if block_b is None:
        base_tiles = pl.cdiv(B8, 256)
        if n_cores >= 2 and B8 >= 2 * sublanes:
            # Dual-TC (v7x): keep both cores busy even for modest batches.
            n_tiles = max(n_cores, base_tiles)
        else:
            # Single-TC (v5e/v6e): 256-row tiles; never split below that.
            n_tiles = max(1, base_tiles)
        block_b = _round_up(pl.cdiv(B8, n_tiles), sublanes)
    else:
        block_b = _round_up(block_b, sublanes)
    Bp = _round_up(B8, block_b)

    # ---- VMEM footprint -> fused vs K-tiled decision + vmem_limit_bytes. ---
    wbytes = jnp.dtype(wdtype).itemsize
    xbytes = jnp.dtype(x.dtype).itemsize
    obytes = jnp.dtype(out_dtype).itemsize
    cap = _vmem_capacity_bytes()
    budget = int(cap * 0.70)

    # Conservative (assumes double-buffered weights in case Buffered(1) is not
    # supported by this build) so the computed limit covers either build.
    fused_bytes = (2 * (D * Hp + Hp * Op) * wbytes + 2 * (Hp + Op) * 4
                   + 2 * block_b * D * xbytes + 2 * block_b * Op * obytes
                   + 2 * block_b * Hp * 4)          # h/g f32 intermediates

    use_ktile = (k_block is not None) or (fused_bytes > budget)

    if use_ktile:
        tk = _round_up(k_block if k_block is not None else min(D, 512), _LANES)
        Dp = _round_up(D, tk)
        x_p = jnp.pad(x, ((0, Bp - B), (0, Dp - D)))
        w1p = jnp.pad(w1p, ((0, Dp - D), (0, 0)))
        footprint = (2 * Hp * Op * wbytes + 2 * (Hp + Op) * 4      # resident
                     + 2 * block_b * tk * xbytes + 2 * tk * Hp * wbytes
                     + 2 * block_b * Op * obytes
                     + block_b * Hp * 4)                            # h_acc
    else:
        tk = Dp = D
        x_p = jnp.pad(x, ((0, Bp - B), (0, 0))) if Bp != B else x
        footprint = fused_bytes

    vmem_limit = min(max(int(footprint * 1.25) + (2 << 20), 32 << 20),
                     int(cap * 0.85))

    args = (x_p, w1p, b1p, w2p, b2p)

    def run(single_buffer_weights):
        if use_ktile:
            kern = functools.partial(_head_ktiled_kernel,
                                     approx_gelu=approx_gelu)
            call = _build_ktiled(kern, block_b, Dp, tk, Hp, Op, Bp, out_dtype,
                                 vmem_limit, single_buffer_weights)
        else:
            kern = functools.partial(_head_fused_kernel,
                                     approx_gelu=approx_gelu)
            call = _build_fused(kern, block_b, D, Hp, Op, Bp, out_dtype,
                                vmem_limit, single_buffer_weights)
        return call(*args)

    global _BUFFERED_WEIGHTS_OK
    if _BUFFERED_WEIGHTS_OK is False:
        out_p = run(False)
    else:
        try:
            out_p = run(True)
            _BUFFERED_WEIGHTS_OK = True
        except _BUFFERED_ERRORS:
            # This build rejects pipeline_mode=pl.Buffered(1): fall back to the
            # default double-buffered resident weights (same results).
            _BUFFERED_WEIGHTS_OK = False
            out_p = run(False)

    return out_p[:B, :O]


# ------------------------------- reference ----------------------------------


def head_reference(x, w1, b1, w2, b2):
    h = x @ w1 + b1
    g = 0.5 * h * (1.0 + lax.erf(h * (1.0 / math.sqrt(2.0))))
    return g @ w2 + b2


def _make_params(key, input_dim, output_dim):
    hidden = input_dim // 4
    k1, k2, k3, k4 = jax.random.split(key, 4)
    bound1 = 1.0 / math.sqrt(input_dim)
    w1 = jax.random.uniform(k1, (input_dim, hidden), jnp.float32, -bound1, bound1)
    b1 = jax.random.uniform(k2, (hidden,), jnp.float32, -bound1, bound1)
    bound2 = 1.0 / math.sqrt(hidden)
    w2 = jax.random.uniform(k3, (hidden, output_dim), jnp.float32, -bound2, bound2)
    b2 = jax.random.uniform(k4, (output_dim,), jnp.float32, -bound2, bound2)
    return w1, b1, w2, b2


if __name__ == "__main__":
    key = jax.random.PRNGKey(0)

    # Case 1: default bf16 MXU path (relaxed tolerance vs f32 reference).
    kx, kp, key = jax.random.split(key, 3)
    B, input_dim, output_dim = 8, 128, 64          # hidden = 32
    x = jax.random.normal(kx, (B, input_dim), dtype=jnp.float32)
    p = _make_params(kp, input_dim, output_dim)
    ref = head_reference(x, *p)
    out_bf16 = jax.block_until_ready(head_forward(x, *p))
    assert out_bf16.shape == (B, output_dim)
    assert jnp.allclose(out_bf16, ref, atol=2e-2, rtol=2e-2), \
        "case1 (bf16 MXU) mismatch vs reference"

    # Case 2: strict f32 numerics path, same inputs.
    out_f32 = jax.block_until_ready(head_forward(x, *p, mxu_dtype=None))
    assert jnp.allclose(out_f32, ref, atol=1e-5, rtol=1e-5), \
        "case2 (f32) mismatch vs reference"

    # Case 3: batch not a multiple of the tile + narrow features (exercises the
    # cdiv/zero-pad batch path and lane padding of hidden/output dims).
    kx2, kp2, key = jax.random.split(key, 3)
    B2, input_dim2, output_dim2 = 10, 64, 24       # hidden = 16
    x2 = jax.random.normal(kx2, (B2, input_dim2), dtype=jnp.float32)
    p2 = _make_params(kp2, input_dim2, output_dim2)
    out2 = jax.block_until_ready(head_forward(x2, *p2, mxu_dtype=None))
    ref2 = head_reference(x2, *p2)
    assert out2.shape == (B2, output_dim2)
    assert jnp.allclose(out2, ref2, atol=1e-5, rtol=1e-5), \
        "case3 mismatch vs reference"

    # Case 4: force the K-tiled (reduction over D) path.
    kx3, kp3, key = jax.random.split(key, 3)
    B3, input_dim3, output_dim3 = 8, 256, 32       # hidden = 64
    x3 = jax.random.normal(kx3, (B3, input_dim3), dtype=jnp.float32)
    p3 = _make_params(kp3, input_dim3, output_dim3)
    out3 = jax.block_until_ready(
        head_forward(x3, *p3, mxu_dtype=None, k_block=128))
    ref3 = head_reference(x3, *p3)
    assert out3.shape == (B3, output_dim3)
    assert jnp.allclose(out3, ref3, atol=1e-5, rtol=1e-5), \
        "case4 (K-tiled) mismatch vs reference"

    print("KERNEL_OK")
</pallas_src>

<mosaic_0001>
module attributes {stable_mosaic.version = 11 : i64} {
  func.func @_head_fused_kernel(%arg0: i32, %arg1: memref<8x128xf32, #tpu.memory_space<vmem>>, %arg2: memref<128x128xbf16, #tpu.memory_space<vmem>>, %arg3: memref<1x128xf32, #tpu.memory_space<vmem>>, %arg4: memref<128x128xbf16, #tpu.memory_space<vmem>>, %arg5: memref<1x128xf32, #tpu.memory_space<vmem>>, %arg6: memref<8x128xf32, #tpu.memory_space<vmem>>) attributes {dimension_semantics = [#tpu.dimension_semantics<parallel>], iteration_bounds = array<i64: 1>, scalar_prefetch = 0 : i64, scratch_operands = 0 : i64, tpu.core_type = #tpu.core_type<tc>, window_params = [{transform_indices = @transform_0, window_bounds = array<i64: 8, 128>}, {pipeline_mode = #tpu.pipeline_mode<synchronous>, transform_indices = @transform_1, window_bounds = array<i64: 128, 128>}, {pipeline_mode = #tpu.pipeline_mode<synchronous>, transform_indices = @transform_2, window_bounds = array<i64: 1, 128>}, {pipeline_mode = #tpu.pipeline_mode<synchronous>, transform_indices = @transform_3, window_bounds = array<i64: 128, 128>}, {pipeline_mode = #tpu.pipeline_mode<synchronous>, transform_indices = @transform_4, window_bounds = array<i64: 1, 128>}, {transform_indices = @transform_5, window_bounds = array<i64: 8, 128>}]} {
    %c0 = arith.constant 0 : index
    %c0_0 = arith.constant 0 : index
    %0 = vector.load %arg1[%c0, %c0_0] : memref<8x128xf32, #tpu.memory_space<vmem>>, vector<8x128xf32>
    %1 = arith.truncf %0 : vector<8x128xf32> to vector<8x128xbf16>
    %c0_1 = arith.constant 0 : index
    %c0_2 = arith.constant 0 : index
    %2 = vector.load %arg2[%c0_1, %c0_2] : memref<128x128xbf16, #tpu.memory_space<vmem>>, vector<128x128xbf16>
    %cst = arith.constant dense<0.000000e+00> : vector<8x128xf32>
    %3 = tpu.matmul %1, %2, %cst {dimension_numbers = #tpu.dot_dimension_numbers<[1], [0], [0], [1], [0, 0, 1, 1], [], []>} : vector<8x128xbf16>, vector<128x128xbf16>, vector<8x128xf32> -> vector<8x128xf32>
    %c0_3 = arith.constant 0 : index
    %c0_4 = arith.constant 0 : index
    %4 = vector.load %arg3[%c0_3, %c0_4] : memref<1x128xf32, #tpu.memory_space<vmem>>, vector<1x128xf32>
    %5 = vector.broadcast %4 : vector<1x128xf32> to vector<8x128xf32>
    %6 = arith.addf %3, %5 : vector<8x128xf32>
    %cst_5 = arith.constant 5.000000e-01 : f32
    %7 = vector.broadcast %cst_5 : f32 to vector<8x128xf32>
    %8 = arith.mulf %7, %6 : vector<8x128xf32>
    %cst_6 = arith.constant 0.707106769 : f32
    %9 = vector.broadcast %cst_6 : f32 to vector<8x128xf32>
    %10 = arith.mulf %6, %9 : vector<8x128xf32>
    %11 = math.erf %10 : vector<8x128xf32>
    %cst_7 = arith.constant 1.000000e+00 : f32
    %12 = vector.broadcast %cst_7 : f32 to vector<8x128xf32>
    %13 = arith.addf %12, %11 : vector<8x128xf32>
    %14 = arith.mulf %8, %13 : vector<8x128xf32>
    %15 = arith.truncf %14 : vector<8x128xf32> to vector<8x128xbf16>
    %c0_8 = arith.constant 0 : index
    %c0_9 = arith.constant 0 : index
    %16 = vector.load %arg4[%c0_8, %c0_9] : memref<128x128xbf16, #tpu.memory_space<vmem>>, vector<128x128xbf16>
    %cst_10 = arith.constant dense<0.000000e+00> : vector<8x128xf32>
    %17 = tpu.matmul %15, %16, %cst_10 {dimension_numbers = #tpu.dot_dimension_numbers<[1], [0], [0], [1], [0, 0, 1, 1], [], []>} : vector<8x128xbf16>, vector<128x128xbf16>, vector<8x128xf32> -> vector<8x128xf32>
    %c0_11 = arith.constant 0 : index
    %c0_12 = arith.constant 0 : index
    %18 = vector.load %arg5[%c0_11, %c0_12] : memref<1x128xf32, #tpu.memory_space<vmem>>, vector<1x128xf32>
    %19 = vector.broadcast %18 : vector<1x128xf32> to vector<8x128xf32>
    %20 = arith.addf %17, %19 : vector<8x128xf32>
    %c0_13 = arith.constant 0 : index
    %c0_14 = arith.constant 0 : index
    %21 = vector.load %arg6[%c0_13, %c0_14] : memref<8x128xf32, #tpu.memory_space<vmem>>, vector<8x128xf32>
    tpu.vector_store %arg6[%c0_13, %c0_14], %20 {strides = array<i32>} : memref<8x128xf32, #tpu.memory_space<vmem>>, vector<8x128xf32>,
    return
  }
  func.func @transform_0(%arg0: i32) -> (i32, i32) {
    %c0_i32 = arith.constant 0 : i32
    %c0_i32_0 = arith.constant 0 : i32
    return %arg0, %c0_i32 : i32, i32
  }
  func.func @transform_1(%arg0: i32) -> (i32, i32) {
    %c0_i32 = arith.constant 0 : i32
    %c0_i32_0 = arith.constant 0 : i32
    %c0_i32_1 = arith.constant 0 : i32
    return %c0_i32, %c0_i32_0 : i32, i32
  }
  func.func @transform_2(%arg0: i32) -> (i32, i32) {
    %c0_i32 = arith.constant 0 : i32
    %c0_i32_0 = arith.constant 0 : i32
    %c0_i32_1 = arith.constant 0 : i32
    return %c0_i32, %c0_i32_0 : i32, i32
  }
  func.func @transform_3(%arg0: i32) -> (i32, i32) {
    %c0_i32 = arith.constant 0 : i32
    %c0_i32_0 = arith.constant 0 : i32
    %c0_i32_1 = arith.constant 0 : i32
    return %c0_i32, %c0_i32_0 : i32, i32
  }
  func.func @transform_4(%arg0: i32) -> (i32, i32) {
    %c0_i32 = arith.constant 0 : i32
    %c0_i32_0 = arith.constant 0 : i32
    %c0_i32_1 = arith.constant 0 : i32
    return %c0_i32, %c0_i32_0 : i32, i32
  }
  func.func @transform_5(%arg0: i32) -> (i32, i32) {
    %c0_i32 = arith.constant 0 : i32
    %c0_i32_0 = arith.constant 0 : i32
    return %arg0, %c0_i32 : i32, i32
  }
}

</mosaic_0001>

<bundles_post_ra>
// kernel: tpu_custom_call.1
= control target key start
LH: loop header
LB: loop body
LE: loop exit
PB: predicated region body
PF: predicated region fallthrough
CT: control target
= control target key end

     0   :  { %10 = vsyncpa [#allocation3], 0  ;;  %s552_s0 = inlined_call_operand.hbm [shape: f32[8,128], index: 0, kind: input, shape index: {}]   ;;  %s553_s1 = inlined_call_operand.hbm [shape: bf16[128,128], index: 1, kind: input, shape index: {}]   ;;  %s554_s2 = inlined_call_operand.vmem [shape: f32[1,128], index: 2, kind: input, shape index: {}]   ;;  %s555_s3 = inlined_call_operand.hbm [shape: bf16[128,128], index: 3, kind: input, shape index: {}]   ;;  %s556_s4 = inlined_call_operand.vmem [shape: f32[1,128], index: 4, kind: input, shape index: {}]   ;;  %s557_s5 = inlined_call_operand.hbm [shape: f32[8,128], index: 5, kind: output, shape index: {}]  }
   0x1   :  { %11 = vsyncpa [#allocation6], 0 }
   0x2   :  { %12 = vsyncpa [#allocation4], 0  ;;  %s496_s18 = smov [#allocation5]  }
   0x3   :  { %s28_s19 = sshll.u32 %s496_s18, 4  ;;  %s29_s19 = int_to_ptr.vmem [resolvable:$true] %s28_s19 }
   0x4   :  { %s418_s20 = scalar_lea.vmem %s29_s19, 1024  ;;  %p423_p1 = scmp.lt.s32.totalorder %s29_s19, %s29_s19 }
   0x5   :  { %p419_p0 = scmp.ne.s32.totalorder %s29_s19, %s418_s20  ;;  %p424_p2 = scmp.lt.s32.totalorder %s418_s20, %s418_s20 }
   0x7   :  { %p425_p3 = por %p424_p2, %p423_p1 }
   0x9   :  { %p426_p4 = pnand %p425_p3, %p419_p0 }
   0xb   :  { %429 = shalt.err (!%p426_p4)
}
   0xc   :  { %s497_s21 = smov 64   ;;  %s498_s22 = smov 4  }
   0xd   :  { %34 = dma.hbm_to_vmem [thread:$0]  %s553_s1, 1024, %s29_s19, [#allocation6], %s497_s21, %s497_s21, %s498_s22  }
   0xe   :  { %s499_s25 = smov [#allocation2]   ;;  %s500_s27 = smov [#allocation7]  }
   0xf   :  { %s19_s26 = sshll.u32 %s499_s25, 4  ;;  %s42_s28 = sshll.u32 %s500_s27, 4  ;;  %s20_s26 = int_to_ptr.vmem [resolvable:$true] %s19_s26  ;;  %s43_s28 = int_to_ptr.vmem [resolvable:$true] %s42_s28 }
  0x10   :  { %s438_s29 = scalar_lea.vmem %s20_s26, 128  ;;  %p443_p6 = scmp.lt.s32.totalorder %s20_s26, %s20_s26 }
  0x11   :  { %p439_p5 = scmp.ne.s32.totalorder %s20_s26, %s438_s29  ;;  %p444_p7 = scmp.lt.s32.totalorder %s438_s29, %s438_s29 }
  0x13   :  { %p445_p8 = por %p444_p7, %p443_p6 }
  0x15   :  { %p446_p9 = pnand %p445_p8, %p439_p5 }
  0x17   :  { %449 = shalt.err (!%p446_p9)
}
  0x18   :  { %22 = dma.hbm_to_vmem [thread:$0]  %s552_s0, 128, %s20_s26, [#allocation3]  }
  0x19   :  { %s458_s7 = scalar_lea.vmem %s43_s28, 1024  ;;  %p463_p11 = scmp.lt.s32.totalorder %s43_s28, %s43_s28 }
  0x1a   :  { %p459_p10 = scmp.ne.s32.totalorder %s43_s28, %s458_s7  ;;  %p464_p12 = scmp.lt.s32.totalorder %s458_s7, %s458_s7 }
  0x1c   :  { %p465_p13 = por %p464_p12, %p463_p11 }
  0x1e   :  { %p466_p0 = pnand %p465_p13, %p459_p10 }
  0x20   :  { %469 = shalt.err (!%p466_p0)
}
  0x21   :  { %48 = dma.hbm_to_vmem [thread:$0]  %s555_s3, 1024, %s43_s28, [#allocation6], %s497_s21, %s497_s21, %s498_s22  }
  0x22   :  { %490 = dma.done.wait [#allocation3], 128  }
  0x23   :  { %491 = vsyncadd [#allocation3], 4294967168 }
  0x24   :  { %492 = dma.done.wait [#allocation6], 2048  }
  0x25   :  { %493 = vsyncadd [#allocation6], 4294965248  ;;  %v501_v0 = vmov 0.0   ;;  %vm502_vm0 = vmmov 0   ;;  %v392_v1 = vld [vmem:[#allocation5 + $0x38] sm:$0xff]   ;;  %v393_v2 = vld [vmem:[#allocation5 + $0x30] sm:$0xff]  }
  0x26   :  { %344 = vmatprep.subr.bf16.mxu0 %v501_v0  ;;  %360 = vmatprep.mubr.msk.bf16.mxu0 %vm502_vm0, %v501_v0  ;;  %v394_v3 = vld [vmem:[#allocation5 + $0x28] sm:$0xff]   ;;  %v400_v4 = vld [vmem:[#allocation7 + $0x38] sm:$0xff]   ;;  %v395_v5 = vld [vmem:[#allocation5 + $0x20] sm:$0xff]   ;;  %s503_s11 = smov [#allocation8]  }
  0x27   :  { %364 = vmatprep.subr.bf16.mxu1 %v501_v0  ;;  %380 = vmatprep.mubr.msk.bf16.mxu1 %vm502_vm0, %v501_v0  ;;  %v401_v6 = vld [vmem:[#allocation7 + $0x30] sm:$0xff]   ;;  %v396_v7 = vld [vmem:[#allocation5 + $0x18] sm:$0xff]   ;;  %v398_v9 = vld [vmem:[#allocation5 + $0x8] sm:$0xff]   ;;  %s298_s12 = sshll.u32 %s503_s11, 4  ;;  %s299_s12 = int_to_ptr.vmem [resolvable:$true] %s298_s12 }
  0x28   :  { %345 = vmatpush3.bf16.msra.mxu0 %v392_v1  ;;  %365 = vmatpush3.bf16.msra.mxu1 %v400_v4  ;;  %v397_v8 = vld [vmem:[#allocation5 + $0x10] sm:$0xff]   ;;  %v399_v10 = vld [vmem:[#allocation5] sm:$0xff]   ;;  %v61_v11 = vld [vmem:[#allocation2] sm:$0xff]  ;;  %p475_p2 = scmp.lt.s32.totalorder %s299_s12, %s299_s12 }
  0x29   :  { %346 = vmatprep.subr.bf16.mxu0 %v501_v0  ;;  %366 = vmatprep.subr.bf16.mxu1 %v501_v0  ;;  %v62_v12 = vpack.c.bf16 %v61_v11, %v61_v11  ;;  %v402_v13 = vld [vmem:[#allocation7 + $0x28] sm:$0xff]   ;;  %v403_v14 = vld [vmem:[#allocation7 + $0x20] sm:$0xff]   ;;  %v404_v15 = vld [vmem:[#allocation7 + $0x18] sm:$0xff]  }
  0x2a   :  { %v405_v16 = vld [vmem:[#allocation7 + $0x10] sm:$0xff]   ;;  %v406_v17 = vld [vmem:[#allocation7 + $0x8] sm:$0xff]   ;;  %v407_v18 = vld [vmem:[#allocation7] sm:$0xff]  }
  0x2b   :  { %v308_v19 = vld [vmem:[%s554_s2] ss:$0 sm:$0xff]  ;;  %s470_s2 = scalar_lea.vmem %s299_s12, 128 }
  0x2c   :  { %347 = vmatpush3.bf16.msra.mxu0 %v393_v2  ;;  %367 = vmatpush3.bf16.msra.mxu1 %v401_v6  ;;  %v317_v31 = vld [vmem:[%s556_s4] ss:$0 sm:$0xff]  ;;  %p471_p1 = scmp.ne.s32.totalorder %s299_s12, %s470_s2  ;;  %p476_p3 = scmp.lt.s32.totalorder %s470_s2, %s470_s2 }
  0x2d   :  { %348 = vmatprep.subr.bf16.mxu0 %v501_v0  ;;  %368 = vmatprep.subr.bf16.mxu1 %v501_v0 }
  0x2e   :  { %p477_p4 = por %p476_p3, %p475_p2 }
  0x30   :  { %349 = vmatpush3.bf16.msra.mxu0 %v394_v3  ;;  %369 = vmatpush3.bf16.msra.mxu1 %v402_v13  ;;  %p478_p5 = pnand %p477_p4, %p471_p1 }
  0x31   :  { %350 = vmatprep.subr.bf16.mxu0 %v501_v0  ;;  %370 = vmatprep.subr.bf16.mxu1 %v501_v0 }
  0x34   :  { %351 = vmatpush3.bf16.msra.mxu0 %v395_v5  ;;  %371 = vmatpush3.bf16.msra.mxu1 %v403_v14 }
  0x35   :  { %352 = vmatprep.subr.bf16.mxu0 %v501_v0  ;;  %372 = vmatprep.subr.bf16.mxu1 %v501_v0 }
  0x38   :  { %353 = vmatpush3.bf16.msra.mxu0 %v396_v7  ;;  %373 = vmatpush3.bf16.msra.mxu1 %v404_v15 }
  0x39   :  { %354 = vmatprep.subr.bf16.mxu0 %v501_v0  ;;  %374 = vmatprep.subr.bf16.mxu1 %v501_v0 }
  0x3c   :  { %355 = vmatpush3.bf16.msra.mxu0 %v397_v8  ;;  %375 = vmatpush3.bf16.msra.mxu1 %v405_v16 }
  0x3d   :  { %356 = vmatprep.subr.bf16.mxu0 %v501_v0  ;;  %376 = vmatprep.subr.bf16.mxu1 %v501_v0 }
  0x40   :  { %357 = vmatpush3.bf16.msra.mxu0 %v398_v9  ;;  %377 = vmatpush3.bf16.msra.mxu1 %v406_v17 }
  0x41   :  { %358 = vmatprep.subr.bf16.mxu0 %v501_v0  ;;  %378 = vmatprep.subr.bf16.mxu1 %v501_v0 }
  0x44   :  { %359 = vmatpush3.bf16.msra.mxu0 %v399_v10  ;;  %379 = vmatpush3.bf16.msra.mxu1 %v407_v18 }
  0x47   :  { %361 = vmatmul.mubr.bf16.vlgmr.msra.gmra.mxu0 %v62_v12 }
 0x107   :  { %v168_v20 = vpop.f32.mrf.mxu0 }
 0x108   :  { %v169_v21 = vadd.f32 %v308_v19, %v168_v20 }
 0x109   :  { %v362_v22 = vpop.f32.mrf.mxu0 }
 0x10a   :  { %v175_v23 = vmul.f32 0.70710677, %v169_v21  ;;  %v174_v27 = vmul.f32 0.5, %v169_v21 }
 0x10b   :  { %v171_v24 = vpop.f32.mrf.mxu0 }
 0x10c   :  { %408 = verf.f32 %v175_v23 }
 0x10d   :  { %v363_v25 = vpop.f32.mrf.mxu0 }
 0x119   :  { %v409_v26 = vpop.eup %408 }
 0x11a   :  { %v177_v28 = vadd.f32 1.0, %v409_v26 }
 0x11c   :  { %v178_v29 = vmul.f32 %v177_v28, %v174_v27 }
 0x11e   :  { %v179_v30 = vpack.c.bf16 %v178_v29, %v178_v29 }
 0x120   :  { %381 = vmatmul.mubr.bf16.vlgmr.msra.gmra.mxu1 %v179_v30 }
 0x1e0   :  { %v285_v32 = vpop.f32.mrf.mxu1 }
 0x1e1   :  { %v286_v33 = vadd.f32 %v317_v31, %v285_v32 }
 0x1e2   :  { %v382_v34 = vpop.f32.mrf.mxu1 }
 0x1e3   :  { %291 = vst [vmem:[#allocation8] sm:$0xff] %v286_v33 }
 0x1e4   :  { %v288_v35 = vpop.f32.mrf.mxu1 }
 0x1e5   :  { %481 = shalt.err (!%p478_p5)
}
 0x1e6   :  { %301 = dma.vmem_to_hbm [thread:$0]  %s299_s12, 128, %s557_s5, [#allocation4]   ;;  %v383_v36 = vpop.f32.mrf.mxu1 }
 0x1e7   :  { %494 = dma.done.wait [#allocation4], 128  }
 0x1e8   :  { %495 = vsyncadd [#allocation4], 4294967168 }
 0x1e9   :  { %305 = vsyncpa [#allocation3], 1 }
 0x1ea   :  { %306 = vsyncpa [#allocation6], 1 }
 0x1eb   :  { %307 = vsyncpa [#allocation4], 1 }

</bundles_post_ra>
